<compile_context>
chip_gen: v7x
topology: tpu7x:2x2x1
jax: 0.10.0
libtpu: 0.0.40
codegen_flags: <defaults>
</compile_context>

<pallas_src>
import functools

import jax
import jax.numpy as jnp
from jax import lax
from jax.experimental import pallas as pl
from jax.experimental.pallas import tpu as pltpu


def _amp_pretext_kernel(label_ref, x_ref, w_ref, b_ref, nll_ref, preds_ref,
                        *, compute_dtype):
    """Fused linear + per-sample NLL + argmax in (K, B_blk) orientation.

    label_ref : SMEM (1,)        int32 -- the scale_label
    x_ref     : VMEM (B_blk, D)        -- block of scaled_x
    w_ref     : VMEM (K, D)            -- classifier weight (native torch layout)
    b_ref     : VMEM (K, 1)            -- classifier bias as a column
    nll_ref   : VMEM (1, B_blk)  f32   -- per-sample NLL (batch on lanes)
    preds_ref : VMEM (1, B_blk)  i32   -- argmax predictions (batch on lanes)
    """
    x = x_ref[...].astype(compute_dtype)   # (B_blk, D)
    w = w_ref[...].astype(compute_dtype)   # (K, D)
    b = b_ref[...].astype(jnp.float32)     # (K, 1)

    # zt[k, b] = sum_d w[k, d] * x[b, d]  -> (K, B_blk) on the MXU.
    # Both operands contract over their last dim (flash-attention-style
    # "rhs transposed" matmul) so no per-block transpose of x is needed.
    zt = lax.dot_general(
        w, x,
        dimension_numbers=(((1,), (1,)), ((), ())),
        preferred_element_type=jnp.float32,
    ) + b                                                          # (K, B_blk) f32

    K = zt.shape[0]
    cls = lax.broadcasted_iota(jnp.int32, zt.shape, 0)             # class idx / row

    # Numerically-stable log-softmax over the class (sublane) axis.
    m = jnp.max(zt, axis=0, keepdims=True)                         # (1, B_blk)
    e = jnp.exp(zt - m)
    s = jnp.sum(e, axis=0, keepdims=True)                          # (1, B_blk)
    lse = m + jnp.log(s)                                           # (1, B_blk)

    # Gather z[label, :] via a mask (label is one scalar for the whole batch).
    label = label_ref[0]
    z_lab = jnp.sum(jnp.where(cls == label, zt, 0.0), axis=0, keepdims=True)

    nll_ref[...] = lse - z_lab                                     # per-sample NLL

    # argmax(softmax(z), -1) == argmax(z, -1); reuse m; first max index on ties.
    idx_or_big = jnp.where(zt == m, cls, K)
    preds_ref[...] = jnp.min(idx_or_big, axis=0, keepdims=True)    # (1, B_blk)


def prepare_params(weight, bias):
    """One-time parameter prep (hoisted out of the forward hot path)."""
    return weight, bias.reshape(-1, 1)   # bias as a (K, 1) column


@functools.partial(jax.jit, static_argnames=("block_b", "compute_dtype"))
def amp_pretext_forward(scaled_x, scale_label, weight, bias_col,
                        block_b=4096, compute_dtype=jnp.float32):
    """scaled_x: (B, D), scale_label: () int, weight: (K, D) (torch Linear
    layout, passed as-is), bias_col: (K, 1)."""
    B, D = scaled_x.shape
    K = bias_col.shape[0]

    # Batch tile: lane-dense multiple of 128 when possible, never larger than B.
    block_b = max(128, (block_b // 128) * 128)
    if B < 128:
        b_blk = B                      # single full block (toy sizes)
    else:
        b_blk = min(block_b, (B // 128) * 128)
    grid = (pl.cdiv(B, b_blk),)

    label_arr = jnp.asarray(scale_label, jnp.int32).reshape(1)

    # VMEM budget: double-buffered x block + lane-dense outputs + resident W/b.
    vmem_need = 2 * (b_blk * D * 4 + 2 * b_blk * 4) + K * D * 4 + K * 4
    vmem_limit = int(min(max(4 * vmem_need, 8 * 1024 * 1024), 32 * 1024 * 1024))

    nll, preds = pl.pallas_call(
        functools.partial(_amp_pretext_kernel, compute_dtype=compute_dtype),
        out_shape=(
            jax.ShapeDtypeStruct((1, B), jnp.float32),   # per-sample NLL
            jax.ShapeDtypeStruct((1, B), jnp.int32),     # preds
        ),
        grid=grid,
        in_specs=[
            pl.BlockSpec(memory_space=pltpu.MemorySpace.SMEM),   # scale_label
            pl.BlockSpec((b_blk, D), lambda i: (i, 0)),          # x block
            pl.BlockSpec((K, D), lambda i: (0, 0)),              # weight (resident)
            pl.BlockSpec((K, 1), lambda i: (0, 0)),              # bias   (resident)
        ],
        out_specs=(
            pl.BlockSpec((1, b_blk), lambda i: (0, i)),          # nll   (lane-dense)
            pl.BlockSpec((1, b_blk), lambda i: (0, i)),          # preds (lane-dense)
        ),
        compiler_params=pltpu.CompilerParams(
            dimension_semantics=("parallel",),
            vmem_limit_bytes=vmem_limit,
        ),
    )(label_arr, scaled_x, weight, bias_col)

    loss = jnp.mean(nll[0])                                       # mean NLL over B
    # Kept for module-semantics fidelity (torch returns a (B,) long tensor).
    label = jnp.full((B,), label_arr[0], dtype=jnp.int32)
    return loss, preds[0], label


def scale_amp(x, key, num_steps=16, prop=0.2):
    """Plain-JAX equivalent of AmpPretext.scale_amp (host-RNG data augmentation;
    not part of the forward hot path, so it stays outside the kernel)."""
    _, C, _ = x.shape
    possible_scales = jnp.linspace(-2.0, 2.0, num_steps)
    k1, k2 = jax.random.split(key)
    scale_label = jax.random.randint(k1, (), 0, num_steps)
    scale = possible_scales[scale_label]
    n_scale = int(C * prop)
    channels_to_scale = jax.random.permutation(k2, C)[:n_scale]
    ch_mask = jnp.zeros((C,), jnp.float32).at[channels_to_scale].set(1.0)
    mult = 1.0 + ch_mask * (scale - 1.0)
    return x * mult[None, :, None], scale_label


def _reference(scaled_x, scale_label, weight, bias):
    B = scaled_x.shape[0]
    z = scaled_x @ weight.T + bias
    lse = jax.scipy.special.logsumexp(z, axis=-1)
    loss = jnp.mean(lse - z[jnp.arange(B), scale_label])
    preds = jnp.argmax(jax.nn.softmax(z, -1), axis=-1).astype(jnp.int32)
    label = jnp.full((B,), scale_label, jnp.int32)
    return loss, preds, label


if __name__ == "__main__":
    key = jax.random.PRNGKey(0)
    k_x, k_w, k_b, k_aug, k_x2 = jax.random.split(key, 5)

    input_dim = 32   # feature dim fed to the classifier
    num_steps = 16   # number of amplitude-scale classes
    B = 8            # small batch (single-block path)
    C, T = 4, 16     # channels / time for the augmentation path

    # Deterministic parameter init (torch Linear shapes: W (K, D), b (K,)).
    bound = 1.0 / jnp.sqrt(input_dim)
    weight = jax.random.uniform(k_w, (num_steps, input_dim), jnp.float32,
                                -bound, bound)
    bias = jax.random.uniform(k_b, (num_steps,), jnp.float32, -bound, bound)
    weight, bias_col = prepare_params(weight, bias)   # one-time relayout

    # Augmentation path (plain JAX), just to exercise scale_amp + get a label.
    raw = jax.random.normal(k_x, (B, C, T), jnp.float32)
    _aug, scale_label = scale_amp(raw, k_aug, num_steps=num_steps, prop=0.2)

    # --- Case 1: toy batch (B=8), single full block. ---------------------
    scaled_x = jax.random.normal(k_x, (B, input_dim), jnp.float32)
    loss, preds, label = amp_pretext_forward(scaled_x, scale_label,
                                             weight, bias_col)
    jax.block_until_ready((loss, preds, label))
    loss_r, preds_r, label_r = _reference(scaled_x, scale_label,
                                          weight, bias.reshape(-1))
    assert jnp.allclose(loss, loss_r, atol=1e-5), (loss, loss_r)
    assert jnp.array_equal(preds, preds_r), (preds, preds_r)
    assert jnp.array_equal(label, label_r)

    # --- Case 2: gridded batch with a partial tail block (B=300, b_blk=256).
    B2 = 300
    scaled_x2 = jax.random.normal(k_x2, (B2, input_dim), jnp.float32)
    loss2, preds2, label2 = amp_pretext_forward(scaled_x2, scale_label,
                                                weight, bias_col)
    jax.block_until_ready((loss2, preds2, label2))
    loss2_r, preds2_r, label2_r = _reference(scaled_x2, scale_label,
                                             weight, bias.reshape(-1))
    assert jnp.allclose(loss2, loss2_r, atol=1e-5), (loss2, loss2_r)
    assert jnp.array_equal(preds2, preds2_r)
    assert jnp.array_equal(label2, label2_r)

    print("KERNEL_OK")
</pallas_src>

<mosaic_0001>
module attributes {stable_mosaic.version = 11 : i64} {
  func.func @_amp_pretext_kernel(%arg0: i32, %arg1: memref<1xi32, #tpu.memory_space<smem>>, %arg2: memref<8x32xf32, #tpu.memory_space<vmem>>, %arg3: memref<16x32xf32, #tpu.memory_space<vmem>>, %arg4: memref<16x1xf32, #tpu.memory_space<vmem>>, %arg5: memref<1x8xf32, #tpu.memory_space<vmem>>, %arg6: memref<1x8xi32, #tpu.memory_space<vmem>>) attributes {dimension_semantics = [#tpu.dimension_semantics<parallel>], iteration_bounds = array<i64: 1>, scalar_prefetch = 0 : i64, scratch_operands = 0 : i64, tpu.core_type = #tpu.core_type<tc>, window_params = [{transform_indices = @transform_0, window_bounds = array<i64: 1>}, {transform_indices = @transform_1, window_bounds = array<i64: 8, 32>}, {pipeline_mode = #tpu.pipeline_mode<synchronous>, transform_indices = @transform_2, window_bounds = array<i64: 16, 32>}, {pipeline_mode = #tpu.pipeline_mode<synchronous>, transform_indices = @transform_3, window_bounds = array<i64: 16, 1>}, {transform_indices = @transform_4, window_bounds = array<i64: 1, 8>}, {transform_indices = @transform_5, window_bounds = array<i64: 1, 8>}]} {
    %c0 = arith.constant 0 : index
    %c0_0 = arith.constant 0 : index
    %0 = vector.load %arg2[%c0, %c0_0] : memref<8x32xf32, #tpu.memory_space<vmem>>, vector<8x32xf32>
    %c0_1 = arith.constant 0 : index
    %c0_2 = arith.constant 0 : index
    %1 = vector.load %arg3[%c0_1, %c0_2] : memref<16x32xf32, #tpu.memory_space<vmem>>, vector<16x32xf32>
    %c0_3 = arith.constant 0 : index
    %c0_4 = arith.constant 0 : index
    %2 = vector.load %arg4[%c0_3, %c0_4] : memref<16x1xf32, #tpu.memory_space<vmem>>, vector<16x1xf32>
    %cst = arith.constant dense<0.000000e+00> : vector<16x8xf32>
    %3 = tpu.matmul %1, %0, %cst {dimension_numbers = #tpu.dot_dimension_numbers<[1], [1], [0], [0], [0, 0, 1, 0], [], []>} : vector<16x32xf32>, vector<8x32xf32>, vector<16x8xf32> -> vector<16x8xf32>
    %4 = vector.broadcast %2 : vector<16x1xf32> to vector<16x8xf32>
    %5 = arith.addf %3, %4 : vector<16x8xf32>
    %6 = tpu.iota {dimensions = array<i32: 0>} : vector<16x8xi32>
    %cst_5 = arith.constant dense<0xFF800000> : vector<8xf32>
    %7 = vector.multi_reduction <maximumf>, %5, %cst_5 [0] : vector<16x8xf32> to vector<8xf32>
    %8 = vector.shape_cast %7 : vector<8xf32> to vector<1x8xf32>
    %9 = vector.broadcast %8 : vector<1x8xf32> to vector<16x8xf32>
    %10 = arith.subf %5, %9 : vector<16x8xf32>
    %11 = math.exp %10 : vector<16x8xf32>
    %cst_6 = arith.constant dense<0.000000e+00> : vector<8xf32>
    %12 = vector.multi_reduction <add>, %11, %cst_6 [0] : vector<16x8xf32> to vector<8xf32>
    %13 = vector.shape_cast %12 : vector<8xf32> to vector<1x8xf32>
    %14 = math.log %13 : vector<1x8xf32>
    %15 = arith.addf %8, %14 : vector<1x8xf32>
    %c0_7 = arith.constant 0 : index
    %16 = memref.load %arg1[%c0_7] : memref<1xi32, #tpu.memory_space<smem>>
    %17 = vector.broadcast %16 : i32 to vector<16x8xi32>
    %18 = arith.cmpi eq, %6, %17 : vector<16x8xi32>
    %cst_8 = arith.constant 0.000000e+00 : f32
    %19 = vector.broadcast %cst_8 : f32 to vector<16x8xf32>
    %20 = arith.select %18, %5, %19 : vector<16x8xi1>, vector<16x8xf32>
    %cst_9 = arith.constant dense<0.000000e+00> : vector<8xf32>
    %21 = vector.multi_reduction <add>, %20, %cst_9 [0] : vector<16x8xf32> to vector<8xf32>
    %22 = vector.shape_cast %21 : vector<8xf32> to vector<1x8xf32>
    %23 = arith.subf %15, %22 : vector<1x8xf32>
    %c0_10 = arith.constant 0 : index
    %c0_11 = arith.constant 0 : index
    %24 = vector.load %arg5[%c0_10, %c0_11] : memref<1x8xf32, #tpu.memory_space<vmem>>, vector<1x8xf32>
    tpu.vector_store %arg5[%c0_10, %c0_11], %23 {strides = array<i32>} : memref<1x8xf32, #tpu.memory_space<vmem>>, vector<1x8xf32>,
    %25 = vector.broadcast %8 : vector<1x8xf32> to vector<16x8xf32>
    %26 = arith.cmpf oeq, %5, %25 : vector<16x8xf32>
    %c16_i32 = arith.constant 16 : i32
    %27 = vector.broadcast %c16_i32 : i32 to vector<16x8xi32>
    %28 = arith.select %26, %6, %27 : vector<16x8xi1>, vector<16x8xi32>
    %cst_12 = arith.constant dense<2147483647> : vector<8xi32>
    %29 = vector.multi_reduction <minsi>, %28, %cst_12 [0] : vector<16x8xi32> to vector<8xi32>
    %30 = vector.shape_cast %29 : vector<8xi32> to vector<1x8xi32>
    %c0_13 = arith.constant 0 : index
    %c0_14 = arith.constant 0 : index
    %31 = vector.load %arg6[%c0_13, %c0_14] : memref<1x8xi32, #tpu.memory_space<vmem>>, vector<1x8xi32>
    tpu.vector_store %arg6[%c0_13, %c0_14], %30 {strides = array<i32>} : memref<1x8xi32, #tpu.memory_space<vmem>>, vector<1x8xi32>,
    return
  }
  func.func @transform_0(%arg0: i32) -> i32 {
    %c0_i32 = arith.constant 0 : i32
    %c0_i32_0 = arith.constant 0 : i32
    return %c0_i32 : i32
  }
  func.func @transform_1(%arg0: i32) -> (i32, i32) {
    %c0_i32 = arith.constant 0 : i32
    %c0_i32_0 = arith.constant 0 : i32
    return %arg0, %c0_i32 : i32, i32
  }
  func.func @transform_2(%arg0: i32) -> (i32, i32) {
    %c0_i32 = arith.constant 0 : i32
    %c0_i32_0 = arith.constant 0 : i32
    %c0_i32_1 = arith.constant 0 : i32
    return %c0_i32, %c0_i32_0 : i32, i32
  }
  func.func @transform_3(%arg0: i32) -> (i32, i32) {
    %c0_i32 = arith.constant 0 : i32
    %c0_i32_0 = arith.constant 0 : i32
    %c0_i32_1 = arith.constant 0 : i32
    return %c0_i32, %c0_i32_0 : i32, i32
  }
  func.func @transform_4(%arg0: i32) -> (i32, i32) {
    %c0_i32 = arith.constant 0 : i32
    %c0_i32_0 = arith.constant 0 : i32
    return %c0_i32, %arg0 : i32, i32
  }
  func.func @transform_5(%arg0: i32) -> (i32, i32) {
    %c0_i32 = arith.constant 0 : i32
    %c0_i32_0 = arith.constant 0 : i32
    return %c0_i32, %arg0 : i32, i32
  }
}

</mosaic_0001>

<bundles_post_ra>
// kernel: amp_pretext_forward.1
= control target key start
LH: loop header
LB: loop body
LE: loop exit
PB: predicated region body
PF: predicated region fallthrough
CT: control target
= control target key end

     0   :  { %vm36_vm0 = vcmask 261120   ;;  %s325_s0 = inlined_call_operand.<no memory space> [shape: s32[1], index: 0, kind: input, shape index: {}]   ;;  %s326_s1 = inlined_call_operand.vmem [shape: f32[8,32], index: 1, kind: input, shape index: {}]   ;;  %s327_s2 = inlined_call_operand.vmem [shape: f32[16,32], index: 2, kind: input, shape index: {}]   ;;  %s328_s3 = inlined_call_operand.vmem [shape: f32[16,1], index: 3, kind: input, shape index: {}]   ;;  %s329_s4 = inlined_call_operand.vmem [shape: f32[1,8], index: 4, kind: output, shape index: {0}]   ;;  %s330_s5 = inlined_call_operand.hbm [shape: s32[1,8], index: 5, kind: output, shape index: {1}]  }
   0x1   :  { %v21_v0 = vld [vmem:[%s326_s1] sm:$0xff] }
   0x2   :  { %v22_v1 = vld [vmem:[%s327_s2] sm:$0xff]  ;;  %212 = vmatprep.subr.msk.mxu0 %vm36_vm0, %v21_v0 }
   0x3   :  { %214 = vmatprep.mubr.msk.f32.mxu0 %vm36_vm0, %v22_v1  ;;  %v24_v2 = vld [vmem:[%s328_s3] sm:$0xff] }
   0x4   :  { %12 = vsyncpa [#allocation4], 0  ;;  %213 = vmatpush3.xpose.msk.msra.mxu0 %vm36_vm0, %v21_v0  ;;  %v23_v3 = vld [vmem:[%s327_s2 + $0x8] sm:$0xff]  ;;  %v250_v4 = vmov 0   ;;  %v121_v6 = vlaneseq  ;;  %v153_v10 = vstv %s325_s0  ;;  %vm124_vm1 = vcmask 64512   ;;  %s251_s0 = smov [#allocation3]  }
   0x5   :  { %219 = vset.pattern.permute.xlu0 %v250_v4  ;;  %v25_v5 = vld [vmem:[%s328_s3 + $0x8] sm:$0xff]  ;;  %s196_s2 = sshll.u32 %s251_s0, 4  ;;  %vm168_vm9 = vcmask 57344   ;;  %s197_s2 = int_to_ptr.vmem [resolvable:$true] %s196_s2 }
   0x6   :  { %28 = vperm.xlu0 %219, %v24_v2   ;;  %v122_v7 = vshrl.u32 %v121_v6, 7  ;;  %s226_s3 = scalar_lea.vmem %s197_s2, 16  ;;  %s230_s29 = scalar_lea.vmem %s197_s2, 32 }
   0x7   :  { %215 = vmatmul.mubr.msk.f32.vlgmr.msra.gmra.mrb[0].mxu0 %vm36_vm0, %v23_v3  ;;  %p227_p0 = scmp.ne.s32.totalorder %s197_s2, %s226_s3  ;;  %p231_p1 = scmp.lt.s32.totalorder %s197_s2, %s197_s2 }
   0x8   :  { %v123_v9 = vadd.s32 8, %v122_v7  ;;  %vm154_vm3 = vcmp.eq.s32.totalorder %v122_v7, %v153_v10  ;;  %p232_p2 = scmp.lt.s32.totalorder %s230_s29, %s226_s3 }
   0xa   :  { %33 = vperm.xlu0 %219, %v25_v5   ;;  %vm155_vm2 = vcmp.eq.s32.totalorder %v123_v9, %v153_v10  ;;  %p233_p3 = por %p232_p2, %p231_p1 }
   0xc   :  { %p234_p4 = pnand %p233_p3, %p227_p0 }
  0x85   :  { %v29_v8 = vpop.permute.xlu0 %28 }
  0x89   :  { %v34_v11 = vpop.permute.xlu0 %33 }
  0xda   :  { %v216_v12 = vpop.f32.mrb[0].mxu0 }
  0xdb   :  { %v118_v13 = vadd.f32 %v216_v12, %v34_v11  ;;  %v112_v14 = vpop.f32.mrb[1].mxu0 }
  0xdc   :  { %v113_v15 = vadd.f32 %v112_v14, %v29_v8 }
  0xdd   :  { %v126_v16 = vsel %vm124_vm1, %v118_v13, -inf  ;;  %v157_v17 = vsel %vm155_vm2, %v118_v13, 0.0 }
  0xde   :  { %v159_v18 = vsel %vm124_vm1, %v157_v17, 0.0  ;;  %v125_v19 = vsel %vm124_vm1, %v113_v15, -inf  ;;  %v156_v20 = vsel %vm154_vm3, %v113_v15, 0.0 }
  0xdf   :  { %v127_v21 = vmax.f32 %v125_v19, %v126_v16  ;;  %v158_v22 = vsel %vm124_vm1, %v156_v20, 0.0 }
  0xe0   :  { %v160_v23 = vadd.f32 %v159_v18, %v158_v22 }
  0xe1   :  { %v128_v24 = vrot.slane %v127_v21, 4 }
  0xe3   :  { %v129_v25 = vmax.f32 %v127_v21, %v128_v24 }
  0xe5   :  { %v130_v26 = vrot.slane %v129_v25, 2 }
  0xe7   :  { %v131_v27 = vmax.f32 %v129_v25, %v130_v26 }
  0xe9   :  { %v132_v28 = vrot.slane %v131_v27, 1 }
  0xeb   :  { %v133_v29 = vmax.f32 %v131_v27, %v132_v28 }
  0xed   :  { %v134_v30 = vsub.f32 %v113_v15, %v133_v29  ;;  %v135_v31 = vsub.f32 %v118_v13, %v133_v29  ;;  %vm170_vm4 = vcmp.eq.f32.partialorder %v113_v15, %v133_v29  ;;  %vm171_vm5 = vcmp.eq.f32.partialorder %v118_v13, %v133_v29 }
  0xee   :  { %v172_v32 = vsel %vm170_vm4, %v122_v7, 16  ;;  %v173_v33 = vsel %vm171_vm5, %v123_v9, 16 }
  0xef   :  { %v136_v34 = vmul.f32 1.442695, %v134_v30  ;;  %v138_v35 = vmul.f32 1.442695, %v135_v31  ;;  %v174_v36 = vsel %vm124_vm1, %v172_v32, 2147483647 }
  0xf0   :  { %v175_v37 = vsel %vm124_vm1, %v173_v33, 2147483647 }
  0xf1   :  { %220 = vpow2.f32 %v136_v34  ;;  %vm176_vm6 = vcmp.lt.s32.totalorder %v174_v36, %v175_v37 }
  0xf2   :  { %222 = vpow2.f32 %v138_v35  ;;  %v177_v38 = vsel %vm176_vm6, %v174_v36, %v175_v37 }
  0xf3   :  { %v178_v39 = vrot.slane %v177_v38, 4 }
  0xf5   :  { %vm179_vm7 = vcmp.lt.s32.totalorder %v177_v38, %v178_v39 }
  0xf6   :  { %v180_v40 = vsel %vm179_vm7, %v177_v38, %v178_v39 }
  0xf7   :  { %v181_v41 = vrot.slane %v180_v40, 2 }
  0xf9   :  { %vm182_vm8 = vcmp.lt.s32.totalorder %v180_v40, %v181_v41 }
  0xfa   :  { %v183_v42 = vsel %vm182_vm8, %v180_v40, %v181_v41 }
  0xfb   :  { %v221_v43 = vpop.eup %220  ;;  %v184_v44 = vrot.slane %v183_v42, 1 }
  0xfc   :  { %v223_v45 = vpop.eup %222  ;;  %v140_v46 = vsel %vm124_vm1, %v221_v43, 0.0 }
  0xfd   :  { %v141_v47 = vsel %vm124_vm1, %v223_v45, 0.0  ;;  %vm185_vm10 = vcmp.lt.s32.totalorder %v183_v42, %v184_v44 }
  0xfe   :  { %v142_v48 = vadd.f32 %v141_v47, %v140_v46  ;;  %v186_v49 = vsel %vm185_vm10, %v183_v42, %v184_v44 }
  0xff   :  { %187 = vst.msk [vmem:[#allocation3] sm:$0x1] %vm168_vm9, %v186_v49 }
 0x100   :  { %v143_v50 = vrot.slane %v142_v48, 4 }
 0x101   :  { %237 = shalt.err (!%p234_p4)
}
 0x102   :  { %s238_s7 = scalar_lea.hbm %s330_s5, 16 }
 0x103   :  { %p239_p5 = scmp.ne.s32.totalorder %s330_s5, %s238_s7  ;;  %p242_p6 = scmp.lt.u32.totalorder %s238_s7, %s330_s5 }
 0x105   :  { %p244_p7 = pnand %p242_p6, %p239_p5 }
 0x107   :  { %247 = shalt.err (!%p244_p7)
}
 0x108   :  { %199 = dma.vmem_to_hbm [thread:$0]  %s197_s2, 16, %s330_s5, [#allocation4]   ;;  %v144_v51 = vadd.f32 %v143_v50, %v142_v48  ;;  %v161_v53 = vrot.slane %v160_v23, 4 }
 0x10a   :  { %v145_v52 = vrot.slane %v144_v51, 2  ;;  %v162_v56 = vadd.f32 %v161_v53, %v160_v23 }
 0x10c   :  { %v146_v54 = vadd.f32 %v145_v52, %v144_v51  ;;  %v163_v58 = vrot.slane %v162_v56, 2 }
 0x10e   :  { %v147_v55 = vrot.slane %v146_v54, 1  ;;  %v164_v59 = vadd.f32 %v163_v58, %v162_v56 }
 0x110   :  { %v148_v57 = vadd.f32 %v147_v55, %v146_v54  ;;  %v165_v60 = vrot.slane %v164_v59, 1 }
 0x112   :  { %224 = vlog2.f32 %v148_v57  ;;  %v166_v0 = vadd.f32 %v165_v60, %v164_v59 }
 0x11c   :  { %v225_v61 = vpop.eup %224 }
 0x11d   :  { %v150_v62 = vmul.f32 0.6931472, %v225_v61 }
 0x11f   :  { %v151_v63 = vadd.f32 %v150_v62, %v133_v29 }
 0x121   :  { %v167_v1 = vsub.f32 %v151_v63, %v166_v0 }
 0x123   :  { %169 = vst.msk [vmem:[%s329_s4] sm:$0x1] %vm168_vm9, %v167_v1 }
 0x124   :  { %248 = dma.done.wait [#allocation4], 16  }
 0x125   :  { %249 = vsyncadd [#allocation4], 4294967280 }
 0x126   :  { %205 = vsyncpa [#allocation4], 1 }

</bundles_post_ra>
